<compile_context>
chip_gen: v5e
topology: v5e:2x2
jax: 0.10.0
libtpu: 0.0.40
codegen_flags: <defaults>
</compile_context>

<pallas_src>
import math
import functools

import jax
import jax.numpy as jnp
from jax import lax
from jax.experimental import pallas as pl
from jax.experimental.pallas import tpu as pltpu


# ----------------------------------------------------------------------------
# Kernel A: fused pixel-encoder conv stack (all layers), one image per step
# ----------------------------------------------------------------------------
def _conv_layer(in_ref, out_ref, w_ref, b_ref, *, k, h_out, w_out, c_in, n_f,
                compute_dtype):
    """Valid stride-1 k x k conv (NHWC) as k*k shifted MXU matmuls + bias + ReLU."""
    # Hoist tap weights / bias out of the row loop (loop-invariant).
    w_taps = [w_ref[t] for t in range(k * k)]          # each [c_in, n_f] (bf16)
    bias = b_ref[...]                                  # [1, n_f] f32

    def row_body(ho, carry):
        # k consecutive input rows needed for output row `ho`.
        win = in_ref[pl.ds(ho, k), :, :].astype(compute_dtype)   # [k, w_in, c_in]
        acc = jnp.zeros((w_out, n_f), jnp.float32)
        for i in range(k):
            row = win[i]                                          # [w_in, c_in]
            for j in range(k):
                patch = row[j:j + w_out, :]                       # [w_out, c_in]
                acc = acc + jnp.dot(patch, w_taps[i * k + j],
                                    preferred_element_type=jnp.float32)
        acc = jnp.maximum(acc + bias, 0.0)
        out_ref[ho, :, :] = acc.astype(out_ref.dtype)
        return carry

    lax.fori_loop(0, h_out, row_body, 0)


def _conv_stack_kernel(*refs, layer_cfgs, compute_dtype):
    n_layers = len(layer_cfgs)
    x_ref = refs[0]
    w_refs = [refs[1 + 2 * l] for l in range(n_layers)]
    b_refs = [refs[2 + 2 * l] for l in range(n_layers)]
    o_ref = refs[1 + 2 * n_layers]
    scratch = refs[2 + 2 * n_layers:]

    in_ref = x_ref
    for l, (k, h_out, w_out, c_in, n_f) in enumerate(layer_cfgs):
        out_ref = o_ref if l == n_layers - 1 else scratch[l]
        _conv_layer(in_ref, out_ref, w_refs[l], b_refs[l],
                    k=k, h_out=h_out, w_out=w_out, c_in=c_in, n_f=n_f,
                    compute_dtype=compute_dtype)
        in_ref = out_ref


def conv_stack(xs, conv_ws, conv_bs, layer_cfgs, out_hw, n_f, compute_dtype):
    """xs: [B, Hs, Ws, C'] space-to-depth NHWC input -> [B, Ho, Wo, F] NHWC."""
    B = xs.shape[0]
    ho, wo = out_hw

    in_specs = [pl.BlockSpec((None,) + xs.shape[1:], lambda b: (b, 0, 0, 0))]
    inputs = [xs]
    for w, bias in zip(conv_ws, conv_bs):
        in_specs.append(pl.BlockSpec(w.shape, lambda b: (0, 0, 0)))
        in_specs.append(pl.BlockSpec(bias.shape, lambda b: (0, 0)))
        inputs.extend([w, bias])

    out_spec = pl.BlockSpec((None, ho, wo, n_f), lambda b: (b, 0, 0, 0))
    scratch = [pltpu.VMEM((h, w, f), jnp.float32)
               for (_k, h, w, _c, f) in layer_cfgs[:-1]]

    return pl.pallas_call(
        functools.partial(_conv_stack_kernel, layer_cfgs=tuple(layer_cfgs),
                          compute_dtype=compute_dtype),
        grid=(B,),
        in_specs=in_specs,
        out_specs=out_spec,
        out_shape=jax.ShapeDtypeStruct((B, ho, wo, n_f), compute_dtype),
        scratch_shapes=scratch,
        compiler_params=pltpu.CompilerParams(dimension_semantics=("parallel",)),
    )(*inputs)


# ----------------------------------------------------------------------------
# Kernel B: fused encoder-fc + LayerNorm + trunk MLP + squashed-Gaussian head
# ----------------------------------------------------------------------------
def _head_kernel(h_ref, fcw_ref, fcb_ref, lng_ref, lnb_ref,
                 w1_ref, b1_ref, w2_ref, b2_ref, w3_ref, b3_ref, noise_ref,
                 mu_ref, pi_ref, logpi_ref, logstd_ref,
                 *, action_dim, log_std_min, log_std_max, compute_dtype):
    h = h_ref[...]                                      # bf16 [TB, Dflat]

    # encoder fc + LayerNorm (output_logits=True -> no tanh), f32 math.
    z = jnp.dot(h, fcw_ref[...], preferred_element_type=jnp.float32) + fcb_ref[...]
    mean = jnp.mean(z, axis=-1, keepdims=True)
    var = jnp.mean(jnp.square(z - mean), axis=-1, keepdims=True)
    z = (z - mean) * lax.rsqrt(var + 1e-5)
    z = z * lng_ref[...] + lnb_ref[...]

    # trunk MLP (bf16 operands, f32 accumulation)
    a = jnp.dot(z.astype(compute_dtype), w1_ref[...],
                preferred_element_type=jnp.float32) + b1_ref[...]
    a = jnp.maximum(a, 0.0)
    a = jnp.dot(a.astype(compute_dtype), w2_ref[...],
                preferred_element_type=jnp.float32) + b2_ref[...]
    a = jnp.maximum(a, 0.0)
    out = jnp.dot(a.astype(compute_dtype), w3_ref[...],
                  preferred_element_type=jnp.float32) + b3_ref[...]

    # chunk(2, dim=-1)
    mu = out[:, :action_dim]
    log_std = out[:, action_dim:]

    # squash / rescale log_std
    log_std = jnp.tanh(log_std)
    log_std = log_std_min + 0.5 * (log_std_max - log_std_min) * (log_std + 1.0)

    # reparameterized sample
    std = jnp.exp(log_std)
    noise = noise_ref[...]
    pi = mu + noise * std

    # gaussian_logprob
    residual = jnp.sum(-0.5 * noise * noise - log_std, axis=-1, keepdims=True)
    log_pi = residual - 0.5 * math.log(2.0 * math.pi) * action_dim

    # squash (tanh) + log-det correction
    mu_t = jnp.tanh(mu)
    pi_t = jnp.tanh(pi)
    log_pi = log_pi - jnp.sum(
        jnp.log(jnp.maximum(1.0 - pi_t * pi_t, 0.0) + 1e-6),
        axis=-1, keepdims=True)

    mu_ref[...] = mu_t
    pi_ref[...] = pi_t
    logpi_ref[...] = log_pi
    logstd_ref[...] = log_std


def head_forward(h, params, noise, *, action_dim, log_std_min, log_std_max,
                 compute_dtype):
    B, d_flat = h.shape
    tb = 8 if B % 8 == 0 else B          # batch tile: multiple of 8 or full B
    fcw, fcb, lng, lnb, w1, b1, w2, b2, w3, b3 = params

    def row_spec(n):
        return pl.BlockSpec((tb, n), lambda i: (i, 0))

    def full_spec(shape):
        return pl.BlockSpec(shape, lambda i, _s=len(shape): (0,) * _s)

    in_specs = (row_spec(d_flat),
                full_spec(fcw.shape), full_spec(fcb.shape),
                full_spec(lng.shape), full_spec(lnb.shape),
                full_spec(w1.shape), full_spec(b1.shape),
                full_spec(w2.shape), full_spec(b2.shape),
                full_spec(w3.shape), full_spec(b3.shape),
                row_spec(action_dim))
    out_specs = (row_spec(action_dim), row_spec(action_dim),
                 row_spec(1), row_spec(action_dim))
    out_shape = (jax.ShapeDtypeStruct((B, action_dim), jnp.float32),
                 jax.ShapeDtypeStruct((B, action_dim), jnp.float32),
                 jax.ShapeDtypeStruct((B, 1), jnp.float32),
                 jax.ShapeDtypeStruct((B, action_dim), jnp.float32))

    return pl.pallas_call(
        functools.partial(_head_kernel, action_dim=action_dim,
                          log_std_min=log_std_min, log_std_max=log_std_max,
                          compute_dtype=compute_dtype),
        grid=(B // tb,),
        in_specs=list(in_specs),
        out_specs=out_specs,
        out_shape=out_shape,
        compiler_params=pltpu.CompilerParams(dimension_semantics=("parallel",)),
    )(h, fcw, fcb, lng, lnb, w1, b1, w2, b2, w3, b3, noise)


# ----------------------------------------------------------------------------
# Deterministic parameter init (mirrors weight_init) + Actor wrapper
# ----------------------------------------------------------------------------
def orthogonal_init(key, out_dim, in_dim, gain=1.0):
    """Deterministic orthogonal init (mirrors nn.init.orthogonal_)."""
    n, m = max(out_dim, in_dim), min(out_dim, in_dim)
    a = jax.random.normal(key, (n, m), dtype=jnp.float32)
    q, r = jnp.linalg.qr(a)
    q = q * jnp.sign(jnp.diagonal(r))[None, :]
    if out_dim < in_dim:
        q = q.T
    return (gain * q).astype(jnp.float32)


class ActorPallas:
    def __init__(self, key, obs_shape, action_shape, hidden_dim,
                 encoder_feature_dim, log_std_min, log_std_max,
                 num_layers, num_filters, compute_dtype=jnp.bfloat16):
        C, H, W = obs_shape
        assert H % 2 == 0 and W % 2 == 0, "stride-2 fold assumes even H, W"
        self.obs_shape = obs_shape
        self.action_dim = action_shape[0]
        self.num_filters = num_filters
        self.log_std_min = float(log_std_min)
        self.log_std_max = float(log_std_max)
        self.compute_dtype = compute_dtype

        keys = jax.random.split(key, num_layers + 4)
        gain_relu = math.sqrt(2.0)

        # --- layer 0: 3x3 stride-2 conv folded into a 2x2 stride-1 conv on a
        #     space-to-depth input; /255 normalization folded into the weights.
        w0_t = jnp.zeros((num_filters, C, 3, 3), jnp.float32)
        w0_t = w0_t.at[:, :, 1, 1].set(
            orthogonal_init(keys[0], num_filters, C, gain_relu))
        w0 = jnp.transpose(w0_t, (2, 3, 1, 0))                       # (i,j,c,f)
        w0 = jnp.zeros((4, 4, C, num_filters), jnp.float32).at[:3, :3].set(w0)
        w0 = w0.reshape(2, 2, 2, 2, C, num_filters)                  # (di,pi,dj,pj,c,f)
        w0 = jnp.transpose(w0, (0, 2, 1, 3, 4, 5))                   # (di,dj,pi,pj,c,f)
        w0 = (w0.reshape(4, 4 * C, num_filters) / 255.0).astype(compute_dtype)

        self.conv_w = [w0]
        self.conv_b = [jnp.zeros((1, num_filters), jnp.float32)]
        h_sz, w_sz = H // 2 - 1, W // 2 - 1
        self.layer_cfgs = [(2, h_sz, w_sz, 4 * C, num_filters)]

        # --- remaining 3x3 stride-1 convs (delta-orthogonal init) ---
        for l in range(1, num_layers):
            wt = jnp.zeros((num_filters, num_filters, 3, 3), jnp.float32)
            wt = wt.at[:, :, 1, 1].set(
                orthogonal_init(keys[l], num_filters, num_filters, gain_relu))
            wl = jnp.transpose(wt, (2, 3, 1, 0)).reshape(
                9, num_filters, num_filters).astype(compute_dtype)
            self.conv_w.append(wl)
            self.conv_b.append(jnp.zeros((1, num_filters), jnp.float32))
            h_sz, w_sz = h_sz - 2, w_sz - 2
            assert h_sz > 0 and w_sz > 0
            self.layer_cfgs.append((3, h_sz, w_sz, num_filters, num_filters))

        self.out_hw = (h_sz, w_sz)
        flat_dim = num_filters * h_sz * w_sz

        # --- encoder fc + LayerNorm; fc rows pre-permuted to NHWC flatten order
        fc_t = orthogonal_init(keys[num_layers], encoder_feature_dim, flat_dim)
        fc_w = fc_t.reshape(encoder_feature_dim, num_filters, h_sz, w_sz)
        fc_w = jnp.transpose(fc_w, (2, 3, 1, 0)).reshape(
            flat_dim, encoder_feature_dim).astype(compute_dtype)
        fc_b = jnp.zeros((1, encoder_feature_dim), jnp.float32)
        ln_g = jnp.ones((1, encoder_feature_dim), jnp.float32)
        ln_b = jnp.zeros((1, encoder_feature_dim), jnp.float32)

        # --- trunk: Linear -> ReLU -> Linear -> ReLU -> Linear(2*A)
        #     (weights pre-transposed once: [in, out])
        w1 = orthogonal_init(keys[num_layers + 1], hidden_dim,
                             encoder_feature_dim).T.astype(compute_dtype)
        b1 = jnp.zeros((1, hidden_dim), jnp.float32)
        w2 = orthogonal_init(keys[num_layers + 2], hidden_dim,
                             hidden_dim).T.astype(compute_dtype)
        b2 = jnp.zeros((1, hidden_dim), jnp.float32)
        w3 = orthogonal_init(keys[num_layers + 3], 2 * self.action_dim,
                             hidden_dim).T.astype(compute_dtype)
        b3 = jnp.zeros((1, 2 * self.action_dim), jnp.float32)

        self.head_params = (fc_w, fc_b, ln_g, ln_b, w1, b1, w2, b2, w3, b3)

    def __call__(self, obs, noise_key):
        B = obs.shape[0]
        C, H, W = self.obs_shape

        # NCHW -> space-to-depth NHWC phase layout (single fused XLA gather of
        # obs; the /255 normalization is already folded into the conv weights).
        x = obs.astype(jnp.float32)
        xs = x.reshape(B, C, H // 2, 2, W // 2, 2)
        xs = jnp.transpose(xs, (0, 2, 4, 3, 5, 1)).reshape(B, H // 2, W // 2, 4 * C)
        xs = xs.astype(self.compute_dtype)

        conv_out = conv_stack(xs, self.conv_w, self.conv_b, self.layer_cfgs,
                              self.out_hw, self.num_filters, self.compute_dtype)

        # Free (layout-preserving) reshape; fc rows are permuted to this order.
        h = conv_out.reshape(B, -1)

        noise = jax.random.normal(noise_key, (B, self.action_dim), jnp.float32)
        return head_forward(h, self.head_params, noise,
                            action_dim=self.action_dim,
                            log_std_min=self.log_std_min,
                            log_std_max=self.log_std_max,
                            compute_dtype=self.compute_dtype)


# ----------------------------------------------------------------------------
if __name__ == "__main__":
    key = jax.random.PRNGKey(0)
    k_param, k_obs, k_noise = jax.random.split(key, 3)

    # small, module-consistent shapes
    obs_shape = (4, 16, 16)        # (C, H, W)
    action_shape = (4,)
    hidden_dim = 32
    encoder_feature_dim = 32
    num_layers = 2
    num_filters = 8
    log_std_min, log_std_max = -10.0, 2.0
    batch = 2

    actor = ActorPallas(k_param, obs_shape, action_shape, hidden_dim,
                        encoder_feature_dim, log_std_min, log_std_max,
                        num_layers, num_filters)

    obs = jax.random.uniform(k_obs, (batch,) + obs_shape,
                             minval=0.0, maxval=255.0, dtype=jnp.float32)

    mu, pi, log_pi, log_std = actor(obs, k_noise)
    jax.block_until_ready((mu, pi, log_pi, log_std))

    assert mu.shape == (batch, action_shape[0])
    assert pi.shape == (batch, action_shape[0])
    assert log_pi.shape == (batch, 1)
    assert log_std.shape == (batch, action_shape[0])
    assert bool(jnp.all(jnp.isfinite(mu)))
    assert bool(jnp.all(jnp.isfinite(pi)))
    assert bool(jnp.all(jnp.isfinite(log_pi)))
    assert bool(jnp.all(jnp.isfinite(log_std)))
    assert bool(jnp.all(jnp.abs(mu) <= 1.0)) and bool(jnp.all(jnp.abs(pi) <= 1.0))
    assert bool(jnp.all(log_std >= log_std_min - 1e-3))
    assert bool(jnp.all(log_std <= log_std_max + 1e-3))

    print("KERNEL_OK")
</pallas_src>

<mosaic_0001>
module attributes {stable_mosaic.version = 11 : i64} {
  func.func @_conv_stack_kernel(%arg0: i32, %arg1: memref<1x8x8x16xbf16, #tpu.memory_space<vmem>>, %arg2: memref<4x16x8xbf16, #tpu.memory_space<vmem>>, %arg3: memref<1x8xf32, #tpu.memory_space<vmem>>, %arg4: memref<9x8x8xbf16, #tpu.memory_space<vmem>>, %arg5: memref<1x8xf32, #tpu.memory_space<vmem>>, %arg6: memref<1x5x5x8xbf16, #tpu.memory_space<vmem>>, %arg7: memref<7x7x8xf32, #tpu.memory_space<vmem>>) attributes {dimension_semantics = [#tpu.dimension_semantics<parallel>], iteration_bounds = array<i64: 2>, scalar_prefetch = 0 : i64, scratch_operands = 1 : i64, tpu.core_type = #tpu.core_type<tc>, window_params = [{transform_indices = @transform_0, window_bounds = array<i64: 1, 8, 8, 16>}, {pipeline_mode = #tpu.pipeline_mode<synchronous>, transform_indices = @transform_1, window_bounds = array<i64: 4, 16, 8>}, {pipeline_mode = #tpu.pipeline_mode<synchronous>, transform_indices = @transform_2, window_bounds = array<i64: 1, 8>}, {pipeline_mode = #tpu.pipeline_mode<synchronous>, transform_indices = @transform_3, window_bounds = array<i64: 9, 8, 8>}, {pipeline_mode = #tpu.pipeline_mode<synchronous>, transform_indices = @transform_4, window_bounds = array<i64: 1, 8>}, {transform_indices = @transform_5, window_bounds = array<i64: 1, 5, 5, 8>}]} {
    %c0 = arith.constant 0 : index
    %c0_0 = arith.constant 0 : index
    %c0_1 = arith.constant 0 : index
    %0 = vector.load %arg2[%c0, %c0_0, %c0_1] : memref<4x16x8xbf16, #tpu.memory_space<vmem>>, vector<1x16x8xbf16>
    %1 = vector.shape_cast %0 : vector<1x16x8xbf16> to vector<16x8xbf16>
    %c1 = arith.constant 1 : index
    %c0_2 = arith.constant 0 : index
    %c0_3 = arith.constant 0 : index
    %2 = vector.load %arg2[%c1, %c0_2, %c0_3] : memref<4x16x8xbf16, #tpu.memory_space<vmem>>, vector<1x16x8xbf16>
    %3 = vector.shape_cast %2 : vector<1x16x8xbf16> to vector<16x8xbf16>
    %c2 = arith.constant 2 : index
    %c0_4 = arith.constant 0 : index
    %c0_5 = arith.constant 0 : index
    %4 = vector.load %arg2[%c2, %c0_4, %c0_5] : memref<4x16x8xbf16, #tpu.memory_space<vmem>>, vector<1x16x8xbf16>
    %5 = vector.shape_cast %4 : vector<1x16x8xbf16> to vector<16x8xbf16>
    %c3 = arith.constant 3 : index
    %c0_6 = arith.constant 0 : index
    %c0_7 = arith.constant 0 : index
    %6 = vector.load %arg2[%c3, %c0_6, %c0_7] : memref<4x16x8xbf16, #tpu.memory_space<vmem>>, vector<1x16x8xbf16>
    %7 = vector.shape_cast %6 : vector<1x16x8xbf16> to vector<16x8xbf16>
    %c0_8 = arith.constant 0 : index
    %c0_9 = arith.constant 0 : index
    %8 = vector.load %arg3[%c0_8, %c0_9] : memref<1x8xf32, #tpu.memory_space<vmem>>, vector<1x8xf32>
    %c0_i32 = arith.constant 0 : i32
    %c7_i32 = arith.constant 7 : i32
    %9 = arith.addi %c0_i32, %c7_i32 : i32
    %c1_i32 = arith.constant 1 : i32
    scf.for %arg8 = %c0_i32 to %9 step %c1_i32  : i32 {
      %c0_38 = arith.constant 0 : index
      %30 = arith.index_cast %arg8 : i32 to index
      %c0_39 = arith.constant 0 : index
      %c0_40 = arith.constant 0 : index
      %31 = vector.load %arg1[%c0_38, %30, %c0_39, %c0_40] : memref<1x8x8x16xbf16, #tpu.memory_space<vmem>>, vector<1x2x8x16xbf16>
      %32 = vector.shape_cast %31 : vector<1x2x8x16xbf16> to vector<2x8x16xbf16>
      %cst = arith.constant 0.000000e+00 : f32
      %33 = vector.broadcast %cst : f32 to vector<7x8xf32>
      %34 = vector.extract_strided_slice %32 {offsets = [0, 0, 0], sizes = [1, 8, 16], strides = [1, 1, 1]} : vector<2x8x16xbf16> to vector<1x8x16xbf16>
      %35 = vector.shape_cast %34 : vector<1x8x16xbf16> to vector<8x16xbf16>
      %36 = vector.extract_strided_slice %35 {offsets = [0, 0], sizes = [7, 16], strides = [1, 1]} : vector<8x16xbf16> to vector<7x16xbf16>
      %cst_41 = arith.constant dense<0.000000e+00> : vector<7x8xf32>
      %37 = tpu.matmul %36, %1, %cst_41 {dimension_numbers = #tpu.dot_dimension_numbers<[1], [0], [0], [1], [0, 0, 1, 1], [], []>} : vector<7x16xbf16>, vector<16x8xbf16>, vector<7x8xf32> -> vector<7x8xf32>
      %38 = arith.addf %33, %37 : vector<7x8xf32>
      %39 = vector.extract_strided_slice %35 {offsets = [1, 0], sizes = [7, 16], strides = [1, 1]} : vector<8x16xbf16> to vector<7x16xbf16>
      %cst_42 = arith.constant dense<0.000000e+00> : vector<7x8xf32>
      %40 = tpu.matmul %39, %3, %cst_42 {dimension_numbers = #tpu.dot_dimension_numbers<[1], [0], [0], [1], [0, 0, 1, 1], [], []>} : vector<7x16xbf16>, vector<16x8xbf16>, vector<7x8xf32> -> vector<7x8xf32>
      %41 = arith.addf %38, %40 : vector<7x8xf32>
      %42 = vector.extract_strided_slice %32 {offsets = [1, 0, 0], sizes = [1, 8, 16], strides = [1, 1, 1]} : vector<2x8x16xbf16> to vector<1x8x16xbf16>
      %43 = vector.shape_cast %42 : vector<1x8x16xbf16> to vector<8x16xbf16>
      %44 = vector.extract_strided_slice %43 {offsets = [0, 0], sizes = [7, 16], strides = [1, 1]} : vector<8x16xbf16> to vector<7x16xbf16>
      %cst_43 = arith.constant dense<0.000000e+00> : vector<7x8xf32>
      %45 = tpu.matmul %44, %5, %cst_43 {dimension_numbers = #tpu.dot_dimension_numbers<[1], [0], [0], [1], [0, 0, 1, 1], [], []>} : vector<7x16xbf16>, vector<16x8xbf16>, vector<7x8xf32> -> vector<7x8xf32>
      %46 = arith.addf %41, %45 : vector<7x8xf32>
      %47 = vector.extract_strided_slice %43 {offsets = [1, 0], sizes = [7, 16], strides = [1, 1]} : vector<8x16xbf16> to vector<7x16xbf16>
      %cst_44 = arith.constant dense<0.000000e+00> : vector<7x8xf32>
      %48 = tpu.matmul %47, %7, %cst_44 {dimension_numbers = #tpu.dot_dimension_numbers<[1], [0], [0], [1], [0, 0, 1, 1], [], []>} : vector<7x16xbf16>, vector<16x8xbf16>, vector<7x8xf32> -> vector<7x8xf32>
      %49 = arith.addf %46, %48 : vector<7x8xf32>
      %50 = vector.broadcast %8 : vector<1x8xf32> to vector<7x8xf32>
      %51 = arith.addf %49, %50 : vector<7x8xf32>
      %cst_45 = arith.constant 0.000000e+00 : f32
      %52 = vector.broadcast %cst_45 : f32 to vector<7x8xf32>
      %53 = arith.maximumf %51, %52 : vector<7x8xf32>
      %54 = arith.index_cast %arg8 : i32 to index
      %c0_46 = arith.constant 0 : index
      %c0_47 = arith.constant 0 : index
      %55 = vector.load %arg7[%54, %c0_46, %c0_47] : memref<7x7x8xf32, #tpu.memory_space<vmem>>, vector<1x7x8xf32>
      %56 = vector.shape_cast %55 : vector<1x7x8xf32> to vector<7x8xf32>
      %57 = vector.shape_cast %53 : vector<7x8xf32> to vector<1x7x8xf32>
      tpu.vector_store %arg7[%54, %c0_46, %c0_47], %57 {strides = array<i32>} : memref<7x7x8xf32, #tpu.memory_space<vmem>>, vector<1x7x8xf32>,
    }
    %c7_i32_10 = arith.constant 7 : i32
    %c0_11 = arith.constant 0 : index
    %c0_12 = arith.constant 0 : index
    %c0_13 = arith.constant 0 : index
    %10 = vector.load %arg4[%c0_11, %c0_12, %c0_13] : memref<9x8x8xbf16, #tpu.memory_space<vmem>>, vector<1x8x8xbf16>
    %11 = vector.shape_cast %10 : vector<1x8x8xbf16> to vector<8x8xbf16>
    %c1_14 = arith.constant 1 : index
    %c0_15 = arith.constant 0 : index
    %c0_16 = arith.constant 0 : index
    %12 = vector.load %arg4[%c1_14, %c0_15, %c0_16] : memref<9x8x8xbf16, #tpu.memory_space<vmem>>, vector<1x8x8xbf16>
    %13 = vector.shape_cast %12 : vector<1x8x8xbf16> to vector<8x8xbf16>
    %c2_17 = arith.constant 2 : index
    %c0_18 = arith.constant 0 : index
    %c0_19 = arith.constant 0 : index
    %14 = vector.load %arg4[%c2_17, %c0_18, %c0_19] : memref<9x8x8xbf16, #tpu.memory_space<vmem>>, vector<1x8x8xbf16>
    %15 = vector.shape_cast %14 : vector<1x8x8xbf16> to vector<8x8xbf16>
    %c3_20 = arith.constant 3 : index
    %c0_21 = arith.constant 0 : index
    %c0_22 = arith.constant 0 : index
    %16 = vector.load %arg4[%c3_20, %c0_21, %c0_22] : memref<9x8x8xbf16, #tpu.memory_space<vmem>>, vector<1x8x8xbf16>
    %17 = vector.shape_cast %16 : vector<1x8x8xbf16> to vector<8x8xbf16>
    %c4 = arith.constant 4 : index
    %c0_23 = arith.constant 0 : index
    %c0_24 = arith.constant 0 : index
    %18 = vector.load %arg4[%c4, %c0_23, %c0_24] : memref<9x8x8xbf16, #tpu.memory_space<vmem>>, vector<1x8x8xbf16>
    %19 = vector.shape_cast %18 : vector<1x8x8xbf16> to vector<8x8xbf16>
    %c5 = arith.constant 5 : index
    %c0_25 = arith.constant 0 : index
    %c0_26 = arith.constant 0 : index
    %20 = vector.load %arg4[%c5, %c0_25, %c0_26] : memref<9x8x8xbf16, #tpu.memory_space<vmem>>, vector<1x8x8xbf16>
    %21 = vector.shape_cast %20 : vector<1x8x8xbf16> to vector<8x8xbf16>
    %c6 = arith.constant 6 : index
    %c0_27 = arith.constant 0 : index
    %c0_28 = arith.constant 0 : index
    %22 = vector.load %arg4[%c6, %c0_27, %c0_28] : memref<9x8x8xbf16, #tpu.memory_space<vmem>>, vector<1x8x8xbf16>
    %23 = vector.shape_cast %22 : vector<1x8x8xbf16> to vector<8x8xbf16>
    %c7 = arith.constant 7 : index
    %c0_29 = arith.constant 0 : index
    %c0_30 = arith.constant 0 : index
    %24 = vector.load %arg4[%c7, %c0_29, %c0_30] : memref<9x8x8xbf16, #tpu.memory_space<vmem>>, vector<1x8x8xbf16>
    %25 = vector.shape_cast %24 : vector<1x8x8xbf16> to vector<8x8xbf16>
    %c8 = arith.constant 8 : index
    %c0_31 = arith.constant 0 : index
    %c0_32 = arith.constant 0 : index
    %26 = vector.load %arg4[%c8, %c0_31, %c0_32] : memref<9x8x8xbf16, #tpu.memory_space<vmem>>, vector<1x8x8xbf16>
    %27 = vector.shape_cast %26 : vector<1x8x8xbf16> to vector<8x8xbf16>
    %c0_33 = arith.constant 0 : index
    %c0_34 = arith.constant 0 : index
    %28 = vector.load %arg5[%c0_33, %c0_34] : memref<1x8xf32, #tpu.memory_space<vmem>>, vector<1x8xf32>
    %c0_i32_35 = arith.constant 0 : i32
    %c5_i32 = arith.constant 5 : i32
    %29 = arith.addi %c0_i32_35, %c5_i32 : i32
    %c1_i32_36 = arith.constant 1 : i32
    scf.for %arg8 = %c0_i32_35 to %29 step %c1_i32_36  : i32 {
      %30 = arith.index_cast %arg8 : i32 to index
      %c0_38 = arith.constant 0 : index
      %c0_39 = arith.constant 0 : index
      %31 = vector.load %arg7[%30, %c0_38, %c0_39] : memref<7x7x8xf32, #tpu.memory_space<vmem>>, vector<3x7x8xf32>
      %32 = arith.truncf %31 : vector<3x7x8xf32> to vector<3x7x8xbf16>
      %cst = arith.constant 0.000000e+00 : f32
      %33 = vector.broadcast %cst : f32 to vector<5x8xf32>
      %34 = vector.extract_strided_slice %32 {offsets = [0, 0, 0], sizes = [1, 7, 8], strides = [1, 1, 1]} : vector<3x7x8xbf16> to vector<1x7x8xbf16>
      %35 = vector.shape_cast %34 : vector<1x7x8xbf16> to vector<7x8xbf16>
      %36 = vector.extract_strided_slice %35 {offsets = [0, 0], sizes = [5, 8], strides = [1, 1]} : vector<7x8xbf16> to vector<5x8xbf16>
      %cst_40 = arith.constant dense<0.000000e+00> : vector<5x8xf32>
      %37 = tpu.matmul %36, %11, %cst_40 {dimension_numbers = #tpu.dot_dimension_numbers<[1], [0], [0], [1], [0, 0, 1, 1], [], []>} : vector<5x8xbf16>, vector<8x8xbf16>, vector<5x8xf32> -> vector<5x8xf32>
      %38 = arith.addf %33, %37 : vector<5x8xf32>
      %39 = vector.extract_strided_slice %35 {offsets = [1, 0], sizes = [5, 8], strides = [1, 1]} : vector<7x8xbf16> to vector<5x8xbf16>
      %cst_41 = arith.constant dense<0.000000e+00> : vector<5x8xf32>
      %40 = tpu.matmul %39, %13, %cst_41 {dimension_numbers = #tpu.dot_dimension_numbers<[1], [0], [0], [1], [0, 0, 1, 1], [], []>} : vector<5x8xbf16>, vector<8x8xbf16>, vector<5x8xf32> -> vector<5x8xf32>
      %41 = arith.addf %38, %40 : vector<5x8xf32>
      %42 = vector.extract_strided_slice %35 {offsets = [2, 0], sizes = [5, 8], strides = [1, 1]} : vector<7x8xbf16> to vector<5x8xbf16>
      %cst_42 = arith.constant dense<0.000000e+00> : vector<5x8xf32>
      %43 = tpu.matmul %42, %15, %cst_42 {dimension_numbers = #tpu.dot_dimension_numbers<[1], [0], [0], [1], [0, 0, 1, 1], [], []>} : vector<5x8xbf16>, vector<8x8xbf16>, vector<5x8xf32> -> vector<5x8xf32>
      %44 = arith.addf %41, %43 : vector<5x8xf32>
      %45 = vector.extract_strided_slice %32 {offsets = [1, 0, 0], sizes = [1, 7, 8], strides = [1, 1, 1]} : vector<3x7x8xbf16> to vector<1x7x8xbf16>
      %46 = vector.shape_cast %45 : vector<1x7x8xbf16> to vector<7x8xbf16>
      %47 = vector.extract_strided_slice %46 {offsets = [0, 0], sizes = [5, 8], strides = [1, 1]} : vector<7x8xbf16> to vector<5x8xbf16>
      %cst_43 = arith.constant dense<0.000000e+00> : vector<5x8xf32>
      %48 = tpu.matmul %47, %17, %cst_43 {dimension_numbers = #tpu.dot_dimension_numbers<[1], [0], [0], [1], [0, 0, 1, 1], [], []>} : vector<5x8xbf16>, vector<8x8xbf16>, vector<5x8xf32> -> vector<5x8xf32>
      %49 = arith.addf %44, %48 : vector<5x8xf32>
      %50 = vector.extract_strided_slice %46 {offsets = [1, 0], sizes = [5, 8], strides = [1, 1]} : vector<7x8xbf16> to vector<5x8xbf16>
      %cst_44 = arith.constant dense<0.000000e+00> : vector<5x8xf32>
      %51 = tpu.matmul %50, %19, %cst_44 {dimension_numbers = #tpu.dot_dimension_numbers<[1], [0], [0], [1], [0, 0, 1, 1], [], []>} : vector<5x8xbf16>, vector<8x8xbf16>, vector<5x8xf32> -> vector<5x8xf32>
      %52 = arith.addf %49, %51 : vector<5x8xf32>
      %53 = vector.extract_strided_slice %46 {offsets = [2, 0], sizes = [5, 8], strides = [1, 1]} : vector<7x8xbf16> to vector<5x8xbf16>
      %cst_45 = arith.constant dense<0.000000e+00> : vector<5x8xf32>
      %54 = tpu.matmul %53, %21, %cst_45 {dimension_numbers = #tpu.dot_dimension_numbers<[1], [0], [0], [1], [0, 0, 1, 1], [], []>} : vector<5x8xbf16>, vector<8x8xbf16>, vector<5x8xf32> -> vector<5x8xf32>
      %55 = arith.addf %52, %54 : vector<5x8xf32>
      %56 = vector.extract_strided_slice %32 {offsets = [2, 0, 0], sizes = [1, 7, 8], strides = [1, 1, 1]} : vector<3x7x8xbf16> to vector<1x7x8xbf16>
      %57 = vector.shape_cast %56 : vector<1x7x8xbf16> to vector<7x8xbf16>
      %58 = vector.extract_strided_slice %57 {offsets = [0, 0], sizes = [5, 8], strides = [1, 1]} : vector<7x8xbf16> to vector<5x8xbf16>
      %cst_46 = arith.constant dense<0.000000e+00> : vector<5x8xf32>
      %59 = tpu.matmul %58, %23, %cst_46 {dimension_numbers = #tpu.dot_dimension_numbers<[1], [0], [0], [1], [0, 0, 1, 1], [], []>} : vector<5x8xbf16>, vector<8x8xbf16>, vector<5x8xf32> -> vector<5x8xf32>
      %60 = arith.addf %55, %59 : vector<5x8xf32>
      %61 = vector.extract_strided_slice %57 {offsets = [1, 0], sizes = [5, 8], strides = [1, 1]} : vector<7x8xbf16> to vector<5x8xbf16>
      %cst_47 = arith.constant dense<0.000000e+00> : vector<5x8xf32>
      %62 = tpu.matmul %61, %25, %cst_47 {dimension_numbers = #tpu.dot_dimension_numbers<[1], [0], [0], [1], [0, 0, 1, 1], [], []>} : vector<5x8xbf16>, vector<8x8xbf16>, vector<5x8xf32> -> vector<5x8xf32>
      %63 = arith.addf %60, %62 : vector<5x8xf32>
      %64 = vector.extract_strided_slice %57 {offsets = [2, 0], sizes = [5, 8], strides = [1, 1]} : vector<7x8xbf16> to vector<5x8xbf16>
      %cst_48 = arith.constant dense<0.000000e+00> : vector<5x8xf32>
      %65 = tpu.matmul %64, %27, %cst_48 {dimension_numbers = #tpu.dot_dimension_numbers<[1], [0], [0], [1], [0, 0, 1, 1], [], []>} : vector<5x8xbf16>, vector<8x8xbf16>, vector<5x8xf32> -> vector<5x8xf32>
      %66 = arith.addf %63, %65 : vector<5x8xf32>
      %67 = vector.broadcast %28 : vector<1x8xf32> to vector<5x8xf32>
      %68 = arith.addf %66, %67 : vector<5x8xf32>
      %cst_49 = arith.constant 0.000000e+00 : f32
      %69 = vector.broadcast %cst_49 : f32 to vector<5x8xf32>
      %70 = arith.maximumf %68, %69 : vector<5x8xf32>
      %71 = arith.truncf %70 : vector<5x8xf32> to vector<5x8xbf16>
      %c0_50 = arith.constant 0 : index
      %72 = arith.index_cast %arg8 : i32 to index
      %c0_51 = arith.constant 0 : index
      %c0_52 = arith.constant 0 : index
      %73 = vector.load %arg6[%c0_50, %72, %c0_51, %c0_52] : memref<1x5x5x8xbf16, #tpu.memory_space<vmem>>, vector<1x1x5x8xbf16>
      %74 = vector.shape_cast %73 : vector<1x1x5x8xbf16> to vector<5x8xbf16>
      %75 = vector.shape_cast %71 : vector<5x8xbf16> to vector<1x1x5x8xbf16>
      tpu.vector_store %arg6[%c0_50, %72, %c0_51, %c0_52], %75 {strides = array<i32>} : memref<1x5x5x8xbf16, #tpu.memory_space<vmem>>, vector<1x1x5x8xbf16>,
    }
    %c5_i32_37 = arith.constant 5 : i32
    return
  }
  func.func @transform_0(%arg0: i32) -> (i32, i32, i32, i32) {
    %c0_i32 = arith.constant 0 : i32
    %c0_i32_0 = arith.constant 0 : i32
    %c0_i32_1 = arith.constant 0 : i32
    %c0_i32_2 = arith.constant 0 : i32
    return %arg0, %c0_i32, %c0_i32_0, %c0_i32_1 : i32, i32, i32, i32
  }
  func.func @transform_1(%arg0: i32) -> (i32, i32, i32) {
    %c0_i32 = arith.constant 0 : i32
    %c0_i32_0 = arith.constant 0 : i32
    %c0_i32_1 = arith.constant 0 : i32
    %c0_i32_2 = arith.constant 0 : i32
    return %c0_i32, %c0_i32_0, %c0_i32_1 : i32, i32, i32
  }
  func.func @transform_2(%arg0: i32) -> (i32, i32) {
    %c0_i32 = arith.constant 0 : i32
    %c0_i32_0 = arith.constant 0 : i32
    %c0_i32_1 = arith.constant 0 : i32
    return %c0_i32, %c0_i32_0 : i32, i32
  }
  func.func @transform_3(%arg0: i32) -> (i32, i32, i32) {
    %c0_i32 = arith.constant 0 : i32
    %c0_i32_0 = arith.constant 0 : i32
    %c0_i32_1 = arith.constant 0 : i32
    %c0_i32_2 = arith.constant 0 : i32
    return %c0_i32, %c0_i32_0, %c0_i32_1 : i32, i32, i32
  }
  func.func @transform_4(%arg0: i32) -> (i32, i32) {
    %c0_i32 = arith.constant 0 : i32
    %c0_i32_0 = arith.constant 0 : i32
    %c0_i32_1 = arith.constant 0 : i32
    return %c0_i32, %c0_i32_0 : i32, i32
  }
  func.func @transform_5(%arg0: i32) -> (i32, i32, i32, i32) {
    %c0_i32 = arith.constant 0 : i32
    %c0_i32_0 = arith.constant 0 : i32
    %c0_i32_1 = arith.constant 0 : i32
    %c0_i32_2 = arith.constant 0 : i32
    return %arg0, %c0_i32, %c0_i32_0, %c0_i32_1 : i32, i32, i32, i32
  }
}

</mosaic_0001>

<bundles_post_ra>
// kernel: tpu_custom_call.1
= control target key start
LH: loop header
LB: loop body
LE: loop exit
PB: predicated region body
PF: predicated region fallthrough
CT: control target
= control target key end

     0   :  { %s841_s18 = smov 0   ;;  %s1008_s0 = inlined_call_operand.vmem [shape: bf16[2,8,8,16], index: 0, kind: input, shape index: {}]   ;;  %s1009_s1 = inlined_call_operand.vmem [shape: bf16[4,16,8], index: 1, kind: input, shape index: {}]   ;;  %s1010_s2 = inlined_call_operand.vmem [shape: f32[1,8], index: 2, kind: input, shape index: {}]   ;;  %s1011_s3 = inlined_call_operand.vmem [shape: bf16[9,8,8], index: 3, kind: input, shape index: {}]   ;;  %s1012_s4 = inlined_call_operand.vmem [shape: f32[1,8], index: 4, kind: input, shape index: {}]   ;;  %s1013_s5 = inlined_call_operand.vmem [shape: bf16[2,5,5,8], index: 5, kind: output, shape index: {}]  }
   0x1 LB: > { %s700_s19 = sadd.s32 4294967295, %s801_s18   ;;  %p704_p0 = scmp.ge.s32.totalorder %s801_s18, 1  ;;  %s801_s18 = sphi %s841_s18, %s15_s18  }
   0x2   : > { %p187_p1 = scmp.lt.s32.totalorder %s801_s18, 3 }
   0x4   : > { %p188_p2 = pnand %p704_p0, %p187_p1 }
   0x5   : > { %p215_p3 = scmp.lt.s32.totalorder (!%p188_p2), %s700_s19, 1  ;;  %s896_s23 = smov (!%p188_p2), 0  }
   0x6   : > { %191 = sbr.rel (%p188_p2) target bundleno = 356 (0x164), region = 40 }
   0xb   : > { %v852_v0 = vld [vmem:[%s1009_s1] sm:$0xf]  ;;  %v857_v1 = vld [vmem:[%s1009_s1] sm:$0xf0]  ;;  %v862_v2 = vld [vmem:[%s1009_s1 + $0x8] sm:$0xf] }
   0xc   : > { %v867_v3 = vld [vmem:[%s1009_s1 + $0x8] sm:$0xf0]  ;;  %v872_v4 = vld [vmem:[%s1009_s1 + $0x10] sm:$0xf]  ;;  %s1015_s19 = smov (!%p215_p3, %s700_s19), 1 }
   0xd   : > { %v760_v5 = vld [vmem:[%s1009_s1 + $0x10] sm:$0xf0]  ;;  %v732_v6 = vld [vmem:[%s1009_s1 + $0x18] sm:$0xf]  ;;  %v761_v7 = vld [vmem:[%s1009_s1 + $0x18] sm:$0xf0] }
   0xe   : > { %v237_v8 = vld [vmem:[%s1010_s2] sm:$0x1]  ;;  %s757_s13 = sshll.u32 %s1015_s19, 5  ;;  %s762_s14 = smul.u32 20, %s1015_s19 }
   0xf   : > { %s889_s17 = scalar_lea.vmem %s1008_s0, %s757_s13 }
  0x10   : > { %s894_s22 = scalar_lea.vmem %s1013_s5, %s762_s14 }
  0x11 LB: >> { %v728_v9 = vor.u32 %v760_v5, %v872_v4  ;;  %v723_v10 = vor.u32 %v857_v1, %v852_v0  ;;  %v718_v11 = vor.u32 %v867_v3, %v862_v2  ;;  %v733_v12 = vor.u32 %v761_v7, %v732_v6  ;;  %s714_s19 = sshll.u32 %s805_s23, 2  ;;  %s735_s25 = sshll.u32 %s805_s23, 3  ;;  %s805_s23 = sphi %s896_s23, %s243_s23  }
  0x12   : >> { %vm264_vm0 = vcmask 130048   ;;  %s245_s24 = scalar_lea.vmem %s889_s17, %s714_s19  ;;  %v360_v34 = vperm.slane %v237_v8, 0  ;;  %vm366_vm1 = vcmask 63488   ;;  %s365_s26 = scalar_lea.vmem [#allocation2], %s735_s25 }
  0x13   : >> { %319 = vmatpush.bf16.msra.mxu2 %v728_v9  ;;  %297 = vmatpush.bf16.msra.mxu1 %v723_v10  ;;  %v247_v13 = vld [vmem:[%s245_s24 + $0x4] sm:$0xf]  ;;  %v246_v14 = vld [vmem:[%s245_s24] sm:$0xf]  ;;  %s243_s23 = sadd.s32 1, %s805_s23  }
  0x14   : >> { %275 = vmatpush.bf16.msra.mxu0 %v718_v11  ;;  %352 = vmatpush.bf16.msra.mxu3 %v733_v12  ;;  %v327_v15 = vunpack.c.l.b16 %v247_v13  ;;  %v249_v16 = vunpack.c.l.b16 %v246_v14  ;;  %p240_p4 = scmp.ge.s32.totalorder %s243_s23, 7  }
  0x15   : > { %v919_v41 = vld [vmem:[%s1011_s3] sm:$0xf] (%p240_p4)  ;;  %v924_v42 = vld [vmem:[%s1011_s3 + $0x4] sm:$0xf] (%p240_p4)  ;;  %v929_v43 = vld [vmem:[%s1011_s3 + $0x8] sm:$0xf] (%p240_p4) }
  0x16   : >> { %729 = vmatmul.msk.bf16.vlgmr.msra.gmra.mxu2 %vm264_vm0, %v247_v13  ;;  %724 = vmatmul.msk.bf16.vlgmr.msra.gmra.mxu1 %vm264_vm0, %v246_v14  ;;  %v328_v17 = vpack.c.b16 %v327_v15, %v327_v15  ;;  %v250_v18 = vpack.c.b16 %v249_v16, %v249_v16  ;;  %v934_v44 = vld [vmem:[%s1011_s3 + $0xc] sm:$0xf] (%p240_p4)  ;;  %v939_v45 = vld [vmem:[%s1011_s3 + $0x10] sm:$0xf] (%p240_p4)  ;;  %v944_v46 = vld [vmem:[%s1011_s3 + $0x14] sm:$0xf] (%p240_p4) }
  0x17   : > { %v949_v47 = vld [vmem:[%s1011_s3 + $0x18] sm:$0xf] (%p240_p4)  ;;  %v954_v48 = vld [vmem:[%s1011_s3 + $0x1c] sm:$0xf] (%p240_p4)  ;;  %v959_v49 = vld [vmem:[%s1011_s3 + $0x20] sm:$0xf] (%p240_p4) }
  0x18   : >> { %v330_v19 = vshrl.u32 %v328_v17, 16  ;;  %v332_v20 = vshll.u32 %v328_v17, 16  ;;  %v252_v21 = vshrl.u32 %v250_v18, 16  ;;  %v254_v22 = vshll.u32 %v250_v18, 16  ;;  %v964_v50 = vld [vmem:[%s1012_s4] sm:$0x1] (%p240_p4) }
  0x19   : > { %s966_s24 = smov (%p240_p4), 0  }
  0x1a   : >> { %v334_v23 = vrot.slane %v332_v20, 1  ;;  %v256_v24 = vrot.slane %v254_v22, 1 }
  0x1c   : >> { %v257_v25 = vor.u32 %v256_v24, %v252_v21  ;;  %v335_v26 = vor.u32 %v334_v23, %v330_v19 }
  0x1e   : >> { %719 = vmatmul.msk.bf16.vlgmr.msra.gmra.mxu0 %vm264_vm0, %v257_v25  ;;  %734 = vmatmul.msk.bf16.vlgmr.msra.gmra.mxu3 %vm264_vm0, %v335_v26 }
  0x93   : >> { %v299_v27 = vpop.f32.mrf.mxu1 }
  0x99   : >> { %v321_v28 = vpop.f32.mrf.mxu2 }
  0x9b   : >> { %v301_v29 = vpop.f32.mrf.mxu1  ;;  %v277_v30 = vpop.f32.mrf.mxu0 }
  0x9c   : >> { %v300_v31 = vadd.f32 %v299_v27, %v277_v30 }
  0x9e   : >> { %v325_v32 = vadd.f32 %v321_v28, %v300_v31 }
  0xa1   : >> { %v323_v33 = vpop.f32.mrf.mxu2  ;;  %v354_v35 = vpop.f32.mrf.mxu3 }
  0xa2   : >> { %v358_v36 = vadd.f32 %v354_v35, %v325_v32 }
  0xa3   : >> { %v279_v37 = vpop.f32.mrf.mxu0 }
  0xa4   : >> { %v362_v38 = vadd.f32 %v360_v34, %v358_v36 }
  0xa5   : > { %242 = sbr.rel (!%p240_p4) target bundleno = 17 (0x11), region = 99 }
  0xa6   : >> { %v363_v39 = vmax.f32 %v362_v38, 0.0 }
  0xa8   : >> { %367 = vst.msk [vmem:[%s365_s26] sm:$0x7f] %vm366_vm1, %v363_v39 }
  0xa9   : >> { %v356_v40 = vpop.f32.mrf.mxu3 }
  0xaa LB: >> { %vm414_vm2 = vcmask 1043456   ;;  %s744_s25 = sshll.u32 %s809_s24, 3  ;;  %vm410_vm3 = vcmask 64512   ;;  %s754_s27 = sshll.u32 %s809_s24, 2  ;;  %vm621_vm4 = vcmask 59392   ;;  %s809_s24 = sphi %s966_s24, %s391_s24  }
  0xab   : >> { %v455_v51 = vsel %vm414_vm2, %v929_v43, 0  ;;  %v475_v52 = vsel %vm414_vm2, %v934_v44, 0  ;;  %v416_v53 = vsel %vm414_vm2, %v924_v42, 0  ;;  %v435_v54 = vsel %vm414_vm2, %v919_v41, 0  ;;  %s393_s26 = scalar_lea.vmem [#allocation2], %s744_s25  ;;  %s620_s28 = scalar_lea.vmem %s894_s22, %s754_s27 }
  0xac   : >> { %464 = vmatpush.bf16.msra.mxu2 %v455_v51  ;;  %484 = vmatpush.bf16.msra.mxu3 %v475_v52  ;;  %v505_v55 = vsel %vm414_vm2, %v939_v45, 0  ;;  %v546_v56 = vsel %vm414_vm2, %v949_v47, 0  ;;  %v576_v57 = vsel %vm414_vm2, %v954_v48, 0  ;;  %v526_v58 = vsel %vm414_vm2, %v944_v46, 0  ;;  %s391_s24 = sadd.s32 1, %s809_s24  }
  0xad   : >> { %425 = vmatpush.bf16.msra.mxu0 %v416_v53  ;;  %444 = vmatpush.bf16.msra.mxu1 %v435_v54  ;;  %v597_v14 = vsel %vm414_vm2, %v959_v49, 0  ;;  %vm622_vm5 = vsmask.f32 2304  ;;  %p388_p5 = scmp.ge.s32.totalorder %s391_s24, 5  }
  0xae   : >> { %vm623_vm6 = vmand %vm621_vm4, %vm622_vm5 }
  0xaf   : >> { %v394_v59 = vld [vmem:[%s393_s26] sm:$0x7f]  ;;  %v395_v60 = vld [vmem:[%s393_s26 + $0x8] sm:$0x7f]  ;;  %v396_v61 = vld [vmem:[%s393_s26 + $0x10] sm:$0x7f] }
  0xb0   : >> { %555 = vmatpush.bf16.msrb.mxu2 %v546_v56  ;;  %v397_v62 = vpack.c.bf16 %v394_v59, %v394_v59  ;;  %v398_v63 = vpack.c.bf16 %v395_v60, %v395_v60  ;;  %585 = vmatpush.bf16.msrb.mxu3 %v576_v57  ;;  %v399_v0 = vpack.c.bf16 %v396_v61, %v396_v61  ;;  %v614_v56 = vperm.slane %v964_v50, 0  ;;  %v624_v61 = vld [vmem:[%s620_s28] sm:$0x7] }
  0xb1   : >> { %514 = vmatpush.bf16.msrb.mxu0 %v505_v55  ;;  %535 = vmatpush.bf16.msrb.mxu1 %v526_v58 }
  0xb2   : >> { %v401_v1 = vunpack.c.l.b16 %v397_v62  ;;  %748 = vmatmul.msk.bf16.vlgmr.msra.gmra.mxu3 %vm410_vm3, %v398_v63  ;;  %746 = vmatmul.msk.bf16.vlgmr.msra.gmra.mxu1 %vm410_vm3, %v397_v62  ;;  %v563_v2 = vunpack.c.l.b16 %v399_v0  ;;  %v492_v9 = vunpack.c.l.b16 %v398_v63 }
  0xb4   : >> { %v402_v3 = vpack.c.b16 %v401_v1, %v401_v1  ;;  %v564_v4 = vpack.c.b16 %v563_v2, %v563_v2  ;;  %v493_v15 = vpack.c.b16 %v492_v9, %v492_v9 }
  0xb6   : >> { %v450_v5 = vrot.slane %v402_v3, 1  ;;  %v404_v6 = vshrl.u32 %v402_v3, 16  ;;  %v406_v7 = vshll.u32 %v402_v3, 16  ;;  %v568_v8 = vshll.u32 %v564_v4, 16 }
  0xb7   : >> { %v566_v12 = vshrl.u32 %v564_v4, 16  ;;  %v521_v17 = vrot.slane %v493_v15, 1  ;;  %v497_v18 = vshll.u32 %v493_v15, 16  ;;  %v495_v19 = vshrl.u32 %v493_v15, 16 }
  0xb8   : >> { %747 = vmatmul.msk.bf16.vlgmr.msra.gmra.mxu2 %vm410_vm3, %v450_v5  ;;  %v408_v10 = vrot.slane %v406_v7, 1  ;;  %v570_v13 = vrot.slane %v568_v8, 1  ;;  %v592_v22 = vrot.slane %v564_v4, 1 }
  0xb9   : >> { %v499_v20 = vrot.slane %v497_v18, 1 }
  0xba   : >> { %v409_v11 = vor.u32 %v408_v10, %v404_v6  ;;  %v571_v16 = vor.u32 %v570_v13, %v566_v12 }
  0xbb   : >> { %v500_v21 = vor.u32 %v499_v20, %v495_v19 }
  0xbc   : >> { %745 = vmatmul.msk.bf16.vlgmr.msra.gmra.mxu0 %vm410_vm3, %v409_v11 }
  0xbd   : >> { %606 = vmatpush.bf16.msra.mxu0 %v597_v14 }
  0xc2   : >> { %752 = vmatmul.msk.bf16.vlgmr.msrb.gmra.mxu3 %vm410_vm3, %v571_v16  ;;  %750 = vmatmul.msk.bf16.vlgmr.msrb.gmra.mxu1 %vm410_vm3, %v521_v17 }
  0xc8   : >> { %751 = vmatmul.msk.bf16.vlgmr.msrb.gmra.mxu2 %vm410_vm3, %v399_v0 }
  0xcc   : >> { %749 = vmatmul.msk.bf16.vlgmr.msrb.gmra.mxu0 %vm410_vm3, %v500_v21 }
  0xdc   : >> { %753 = vmatmul.msk.bf16.vlgmr.msra.gmra.mxu0 %vm410_vm3, %v592_v22 }
 0x12f   : >> { %v446_v23 = vpop.f32.mrf.mxu1 }
 0x135   : >> { %v486_v24 = vpop.f32.mrf.mxu3 }
 0x137   : >> { %v448_v25 = vpop.f32.mrf.mxu1 }
 0x139   : >> { %v427_v26 = vpop.f32.mrf.mxu0 }
 0x13a   : >> { %v447_v31 = vadd.f32 %v446_v23, %v427_v26 }
 0x13b   : >> { %v466_v27 = vpop.f32.mrf.mxu2 }
 0x13c   : >> { %v470_v34 = vadd.f32 %v466_v27, %v447_v31 }
 0x13d   : >> { %v488_v28 = vpop.f32.mrf.mxu3 }
 0x13e   : >> { %v490_v37 = vadd.f32 %v486_v24, %v470_v34 }
 0x13f   : >> { %v537_v29 = vpop.f32.mrf.mxu1 }
 0x141   : >> { %v429_v30 = vpop.f32.mrf.mxu0 }
 0x143   : >> { %v468_v32 = vpop.f32.mrf.mxu2 }
 0x145   : >> { %v587_v33 = vpop.f32.mrf.mxu3 }
 0x147   : >> { %v539_v35 = vpop.f32.mrf.mxu1 }
 0x149   : >> { %v516_v36 = vpop.f32.mrf.mxu0 }
 0x14a   : >> { %v520_v39 = vadd.f32 %v516_v36, %v490_v37 }
 0x14b   : >> { %v557_v38 = vpop.f32.mrf.mxu2 }
 0x14c   : >> { %v541_v51 = vadd.f32 %v537_v29, %v520_v39 }
 0x14d   : >> { %v589_v40 = vpop.f32.mrf.mxu3 }
 0x14e   : >> { %v561_v54 = vadd.f32 %v557_v38, %v541_v51 }
 0x150   : >> { %v591_v55 = vadd.f32 %v587_v33, %v561_v54 }
 0x151   : >> { %v518_v52 = vpop.f32.mrf.mxu0 }
 0x153   : >> { %v559_v53 = vpop.f32.mrf.mxu2 }
 0x159   : >> { %v608_v57 = vpop.f32.mrf.mxu0 }
 0x15a   : >> { %v612_v58 = vadd.f32 %v608_v57, %v591_v55 }
 0x15c   : >> { %v616_v59 = vadd.f32 %v614_v56, %v612_v58 }
 0x15e   : >> { %v617_v60 = vmax.f32 %v616_v59, 0.0 }
 0x15f   : > { %390 = sbr.rel (!%p388_p5) target bundleno = 170 (0xaa), region = 110 }
 0x160   : >> { %v618_v62 = vpack.c.bf16 %v617_v60, %v617_v60 }
 0x161   : >> { %v610_v63 = vpop.f32.mrf.mxu0 }
 0x162   : >> { %v625_v0 = vsel %vm623_vm6, %v618_v62, %v624_v61 }
 0x163   : >> { %626 = vst [vmem:[%s620_s28] sm:$0x7] %v625_v0 }
 0x164 PF: > { %s15_s18 = sadd.s32 1, %s801_s18  }
 0x165   : > { %p12_p6 = scmp.ge.s32.totalorder %s15_s18, 4  }
 0x167   :  { %14 = sbr.rel (!%p12_p6) target bundleno = 1 (0x1), region = 121 }

</bundles_post_ra>
